<compile_context>
chip_gen: v6e
topology: v6e:2x2x1
jax: 0.10.0
libtpu: 0.0.40
codegen_flags: <defaults>
</compile_context>

<pallas_src>
import jax
import jax.numpy as jnp
from jax.experimental import pallas as pl
from jax.experimental.pallas import tpu as pltpu


def _ew_linear_kernel(x_ref, w_ref, o_ref):
    # x_ref: (tm, tk)  activation tile
    # w_ref: (1,  tk)  per-feature scale row (broadcast over sublanes)
    # o_ref: (tm, tk)  output tile
    o_ref[...] = (x_ref[...] * w_ref[...]).astype(o_ref.dtype)


def elementwise_linear_forward(x, w):
    """Pallas implementation of y = w * x (broadcast over the last dim).

    x: [..., input_size]
    w: [input_size]
    """
    orig_shape = x.shape
    k = orig_shape[-1]
    assert w.shape == (k,), "weight / feature-dim mismatch"

    x2d = x.reshape(-1, k)
    m = x2d.shape[0]

    # ---- Row (sublane) tiling: big tiles approach the HBM roofline (~85% at
    # 512-wide tiles per the measured numbers); small inputs use the full dim.
    TM = 512
    if m <= TM:
        tm = m                      # full array dim -> (8,128) rule satisfied
        m_pad = m
    else:
        tm = TM
        m_pad = pl.cdiv(m, tm) * tm
        if m_pad != m:
            x2d = jnp.pad(x2d, ((0, m_pad - m), (0, 0)))

    # ---- Feature (lane) tiling: keep K whole unless it is large and cleanly
    # 128/TK-aligned, so the block either equals the full dim or is lane-dense.
    TK = 1024
    if k > TK and k % TK == 0:
        tk = TK
    else:
        tk = k
    k_tiles = k // tk

    w2d = w.reshape(1, k)           # 2-D so it lives cleanly in a vreg tile

    grid = (m_pad // tm, k_tiles)

    itemsize = jnp.dtype(x.dtype).itemsize
    cost = pl.CostEstimate(
        flops=m_pad * k,
        transcendentals=0,
        bytes_accessed=(2 * m_pad * k + k) * itemsize,  # read x, write y, read w
    )

    out = pl.pallas_call(
        _ew_linear_kernel,
        out_shape=jax.ShapeDtypeStruct((m_pad, k), x.dtype),
        grid_spec=pltpu.PrefetchScalarGridSpec(
            num_scalar_prefetch=0,
            grid=grid,
            in_specs=[
                pl.BlockSpec((tm, tk), lambda i, j: (i, j)),
                pl.BlockSpec((1, tk), lambda i, j: (0, j)),
            ],
            out_specs=pl.BlockSpec((tm, tk), lambda i, j: (i, j)),
        ),
        compiler_params=pltpu.CompilerParams(
            # Both axes are independent -> megacore sharding on v7x,
            # harmless no-op on v5e/v6e.
            dimension_semantics=("parallel", "parallel"),
            vmem_limit_bytes=32 * 1024 * 1024,
        ),
        cost_estimate=cost,
    )(x2d, w2d)

    if m_pad != m:
        out = out[:m]
    return out.reshape(orig_shape)


def init_elementwise_linear_params(key, input_size, dtype=jnp.float32):
    """Mirror torch.rand(input_size): U(0, 1)."""
    return jax.random.uniform(key, (input_size,), dtype=dtype,
                              minval=0.0, maxval=1.0)


if __name__ == "__main__":
    input_size = 32
    batch, seq = 2, 8

    key = jax.random.PRNGKey(0)
    k_x, k_w = jax.random.split(key)

    x = jax.random.normal(k_x, (batch, seq, input_size), dtype=jnp.float32)
    w = init_elementwise_linear_params(k_w, input_size)

    y = elementwise_linear_forward(x, w)
    y = jax.block_until_ready(y)

    # sanity check against plain JAX reference (same semantics as torch: w * x)
    y_ref = w * x
    assert y.shape == x.shape
    assert jnp.allclose(y, y_ref, atol=1e-6, rtol=1e-6)

    print("KERNEL_OK")
</pallas_src>

<mosaic_0001>
module attributes {stable_mosaic.version = 11 : i64} {
  func.func @_ew_linear_kernel(%arg0: i32, %arg1: i32, %arg2: memref<16x32xf32, #tpu.memory_space<vmem>>, %arg3: memref<1x32xf32, #tpu.memory_space<vmem>>, %arg4: memref<16x32xf32, #tpu.memory_space<vmem>>) attributes {dimension_semantics = [#tpu.dimension_semantics<parallel>, #tpu.dimension_semantics<parallel>], iteration_bounds = array<i64: 1, 1>, scalar_prefetch = 0 : i64, scratch_operands = 0 : i64, tpu.core_type = #tpu.core_type<tc>, window_params = [{transform_indices = @transform_0, window_bounds = array<i64: 16, 32>}, {transform_indices = @transform_1, window_bounds = array<i64: 1, 32>}, {transform_indices = @transform_2, window_bounds = array<i64: 16, 32>}]} {
    %c0 = arith.constant 0 : index
    %c0_0 = arith.constant 0 : index
    %0 = vector.load %arg2[%c0, %c0_0] : memref<16x32xf32, #tpu.memory_space<vmem>>, vector<16x32xf32>
    %c0_1 = arith.constant 0 : index
    %c0_2 = arith.constant 0 : index
    %1 = vector.load %arg3[%c0_1, %c0_2] : memref<1x32xf32, #tpu.memory_space<vmem>>, vector<1x32xf32>
    %2 = vector.broadcast %1 : vector<1x32xf32> to vector<16x32xf32>
    %3 = arith.mulf %0, %2 : vector<16x32xf32>
    %c0_3 = arith.constant 0 : index
    %c0_4 = arith.constant 0 : index
    %4 = vector.load %arg4[%c0_3, %c0_4] : memref<16x32xf32, #tpu.memory_space<vmem>>, vector<16x32xf32>
    tpu.vector_store %arg4[%c0_3, %c0_4], %3 {strides = array<i32>} : memref<16x32xf32, #tpu.memory_space<vmem>>, vector<16x32xf32>,
    return
  }
  func.func @transform_0(%arg0: i32, %arg1: i32) -> (i32, i32) {
    %c0_i32 = arith.constant 0 : i32
    return %arg0, %arg1 : i32, i32
  }
  func.func @transform_1(%arg0: i32, %arg1: i32) -> (i32, i32) {
    %c0_i32 = arith.constant 0 : i32
    %c0_i32_0 = arith.constant 0 : i32
    return %c0_i32, %arg1 : i32, i32
  }
  func.func @transform_2(%arg0: i32, %arg1: i32) -> (i32, i32) {
    %c0_i32 = arith.constant 0 : i32
    return %arg0, %arg1 : i32, i32
  }
}

</mosaic_0001>

<bundles_post_ra>
// kernel: tpu_custom_call.1
= control target key start
LH: loop header
LB: loop body
LE: loop exit
PB: predicated region body
PF: predicated region fallthrough
CT: control target
= control target key end

     0   :  { %7 = vsyncpa [#allocation3], 0  ;;  %s134_s0 = inlined_call_operand.hbm [shape: f32[16,32], index: 0, kind: input, shape index: {}]   ;;  %s135_s1 = inlined_call_operand.vmem [shape: f32[1,32], index: 1, kind: input, shape index: {}]   ;;  %s136_s2 = inlined_call_operand.hbm [shape: f32[16,32], index: 2, kind: output, shape index: {}]  }
   0x1   :  { %8 = vsyncpa [#allocation4], 0  ;;  %s106_s9 = smov [#allocation2]  }
   0x2   :  { %s14_s10 = sshll.u32 %s106_s9, 4  ;;  %s15_s10 = int_to_ptr.vmem [resolvable:$true] %s14_s10 }
   0x3   :  { %s70_s11 = scalar_lea.vmem %s15_s10, 256  ;;  %p75_p1 = scmp.lt.s32.totalorder %s15_s10, %s15_s10 }
   0x4   :  { %p71_p0 = scmp.ne.s32.totalorder %s15_s10, %s70_s11  ;;  %p76_p2 = scmp.lt.s32.totalorder %s70_s11, %s70_s11 }
   0x6   :  { %p77_p3 = por %p76_p2, %p75_p1 }
   0x8   :  { %p78_p4 = pnand %p77_p3, %p71_p0 }
   0xa   :  { %81 = shalt.err (!%p78_p4)
}
   0xb   :  { %s107_s12 = smov 128   ;;  %s108_s13 = smov 8  }
   0xc   :  { %20 = dma.hbm_to_vmem [thread:$0]  %s134_s0, 256, %s15_s10, [#allocation3], %s107_s12, %s107_s12, %s108_s13  }
   0xd   :  { %102 = dma.done.wait [#allocation3], 256  }
   0xe   :  { %103 = vsyncadd [#allocation3], 4294967040  ;;  %s109_s16 = smov [#allocation5]   ;;  %v26_v0 = vld [vmem:[#allocation2] sm:$0xff]  ;;  %vm37_vm0 = vcmask 261120   ;;  %v27_v2 = vld [vmem:[#allocation2 + $0x8] sm:$0xff] }
   0xf   :  { %s45_s17 = sshll.u32 %s109_s16, 4  ;;  %v57_v1 = vld [vmem:[%s135_s1] ss:$0 sm:$0xff]  ;;  %s46_s17 = int_to_ptr.vmem [resolvable:$true] %s45_s17 }
  0x10   :  { %v35_v3 = vmul.f32 %v57_v1, %v26_v0  ;;  %v36_v4 = vmul.f32 %v57_v1, %v27_v2  ;;  %s82_s20 = scalar_lea.vmem %s46_s17, 256  ;;  %p87_p6 = scmp.lt.s32.totalorder %s46_s17, %s46_s17 }
  0x11   :  { %p83_p5 = scmp.ne.s32.totalorder %s46_s17, %s82_s20  ;;  %p88_p7 = scmp.lt.s32.totalorder %s82_s20, %s82_s20 }
  0x12   :  { %38 = vst.msk [vmem:[#allocation5] sm:$0xff] %vm37_vm0, %v35_v3  ;;  %39 = vst.msk [vmem:[#allocation5 + $0x8] sm:$0xff] %vm37_vm0, %v36_v4 }
  0x13   :  { %p89_p8 = por %p88_p7, %p87_p6 }
  0x15   :  { %p90_p9 = pnand %p89_p8, %p83_p5 }
  0x17   :  { %93 = shalt.err (!%p90_p9)
}
  0x18   :  { %51 = dma.vmem_to_hbm [thread:$0]  %s46_s17, 256, %s136_s2, [#allocation4], %s107_s12, %s107_s12, %s108_s13  }
  0x19   :  { %104 = dma.done.wait [#allocation4], 256  }
  0x1a   :  { %105 = vsyncadd [#allocation4], 4294967040 }
  0x1b   :  { %55 = vsyncpa [#allocation3], 1 }
  0x1c   :  { %56 = vsyncpa [#allocation4], 1 }

</bundles_post_ra>
